<compile_context>
chip_gen: v5e
topology: v5e:2x2
jax: 0.10.0
libtpu: 0.0.40
codegen_flags: <defaults>
</compile_context>

<pallas_src>
import functools

import jax
import jax.numpy as jnp
from jax.experimental import pallas as pl
from jax.experimental.pallas import tpu as pltpu


def _round_up(x, m):
    return (x + m - 1) // m * m


def _choose_tb(batch, cap):
    """Largest divisor of `batch` <= cap that keeps grid length >= 2 (v7x has 2 TCs)."""
    best = 1
    for tb in range(1, min(batch, cap) + 1):
        if batch % tb == 0 and (batch // tb >= 2 or batch == 1):
            best = tb
    return best


# ---------------------------------------------------------------------------
# Fused kernel: conv3x3(+bias,ReLU) -> global-avg-pool -> head MLP -> classifier
# One grid step = TB images; everything stays in VMEM / vregs; 4 MXU dots total.
# ---------------------------------------------------------------------------

def fused_simplenet_kernel(x_ref, w9_ref, bconv_ref, gap_ref,
                           w1_ref, b1_ref, wc_ref, bcls_ref, o_ref):
    # x_ref    : (TB*M, K9P)     bf16  im2col patches (taps folded into channels), image-major rows
    # w9_ref   : (K9P, COUT_P)   bf16  folded 3x3 conv weights
    # bconv_ref: (1, COUT_P)     f32
    # gap_ref  : (TB, TB*M)      bf16  block-diagonal 1/(H*W) pooling matrix
    # w1_ref   : (COUT_P, HID_P) bf16
    # b1_ref   : (1, HID_P)      f32
    # wc_ref   : (HID_P, NC_P)   bf16
    # bcls_ref : (1, NC_P)       f32
    # o_ref    : (1, TB, NC_P)   f32

    # --- 3x3 "same" conv for all TB images as ONE MXU matmul (f32 accumulation) ---
    conv = jnp.dot(x_ref[...], w9_ref[...], preferred_element_type=jnp.float32)
    act = jnp.maximum(conv + bconv_ref[...], 0.0)               # bias + ReLU (f32, VPU)

    # --- global average pool on the MXU (block-diagonal mean matrix) ---
    feat = jnp.dot(gap_ref[...], act.astype(gap_ref.dtype),
                   preferred_element_type=jnp.float32)          # (TB, COUT_P)

    # --- head MLP (Linear + ReLU) fused with classifier Linear, M = TB ---
    hid = jnp.dot(feat.astype(w1_ref.dtype), w1_ref[...],
                  preferred_element_type=jnp.float32) + b1_ref[...]
    hid = jnp.maximum(hid, 0.0)
    logits = jnp.dot(hid.astype(wc_ref.dtype), wc_ref[...],
                     preferred_element_type=jnp.float32) + bcls_ref[...]
    o_ref[0] = logits                                           # (TB, NC_P), lane-dense store


# ---------------------------------------------------------------------------
# One-time parameter prep (hoisted out of the per-call forward)
# ---------------------------------------------------------------------------

def prepare_params(params):
    """Fold the 3x3 taps into the contraction dim, pad to lane-dense shapes, cast to bf16."""
    w_conv = params["w_conv"]                   # (Cout, Cin, 3, 3), torch OIHW layout
    cout, cin = w_conv.shape[0], w_conv.shape[1]
    hid = params["w1"].shape[1]
    nc = params["wc"].shape[1]

    k9 = 9 * cin
    k9_p = _round_up(k9, 128)                   # lane-dense contraction; =128-deep MXU on v5e
    cout_p = _round_up(cout, 128)
    hid_p = _round_up(hid, 128)
    nc_p = _round_up(nc, 128)

    # (kh, kw, cin, cout) -> (9*cin, cout); row index (kh*3+kw)*cin + c matches im2col order.
    w9 = jnp.transpose(w_conv, (2, 3, 1, 0)).reshape(k9, cout)
    w9 = jnp.pad(w9, ((0, k9_p - k9), (0, cout_p - cout))).astype(jnp.bfloat16)
    b_conv = jnp.pad(params["b_conv"], (0, cout_p - cout)).reshape(1, cout_p).astype(jnp.float32)
    w1 = jnp.pad(params["w1"], ((0, cout_p - cout), (0, hid_p - hid))).astype(jnp.bfloat16)
    b1 = jnp.pad(params["b1"], (0, hid_p - hid)).reshape(1, hid_p).astype(jnp.float32)
    wc = jnp.pad(params["wc"], ((0, hid_p - hid), (0, nc_p - nc))).astype(jnp.bfloat16)
    bc = jnp.pad(params["bc"], (0, nc_p - nc)).reshape(1, nc_p).astype(jnp.float32)
    return {"w9": w9, "b_conv": b_conv, "w1": w1, "b1": b1, "wc": wc, "bc": bc}


# ---------------------------------------------------------------------------
# Forward wrapper: input im2col (taps folded into channels) + single pallas_call
# ---------------------------------------------------------------------------

@functools.partial(jax.jit, static_argnames=("num_classes", "tb_cap"))
def simple_net_forward(x_nchw, prep, *, num_classes, tb_cap=8):
    """SimpleNet forward (y_input=None, return_feature=False) -> logits (B, num_classes)."""
    B, Cin, H, W = x_nchw.shape
    M = H * W
    K9P = prep["w9"].shape[0]
    COUT_P = prep["w9"].shape[1]
    HID_P = prep["w1"].shape[1]
    NC_P = prep["wc"].shape[1]

    TB = _choose_tb(B, tb_cap)          # batch tile per grid step (keeps grid >= 2 when B >= 2)
    steps = B // TB

    # ---- input prep: NCHW -> NHWC, fold the 9 taps into channels, pad K to 128, flatten ----
    x = jnp.transpose(x_nchw, (0, 2, 3, 1))                          # (B, H, W, Cin)
    xp = jnp.pad(x, ((0, 0), (1, 1), (1, 1), (0, 0)))                # (B, H+2, W+2, Cin)
    patches = [xp[:, kh:kh + H, kw:kw + W, :]
               for kh in range(3) for kw in range(3)]
    xim = jnp.concatenate(patches, axis=-1)                          # (B, H, W, 9*Cin)
    xim = jnp.pad(xim, ((0, 0), (0, 0), (0, 0), (0, K9P - 9 * Cin)))
    x_flat = xim.reshape(B * M, K9P).astype(jnp.bfloat16)            # (B*M, K9P)

    # Block-diagonal GAP matrix: gap[t, t*M:(t+1)*M] = 1/(H*W). Constant-folded under jit.
    rows = jnp.arange(TB)[:, None]
    cols = jnp.arange(TB * M)[None, :]
    gap = jnp.where(cols // M == rows, 1.0 / M, 0.0).astype(jnp.bfloat16)

    out = pl.pallas_call(
        fused_simplenet_kernel,
        out_shape=jax.ShapeDtypeStruct((steps, TB, NC_P), jnp.float32),
        grid=(steps,),
        in_specs=[
            pl.BlockSpec((TB * M, K9P), lambda g: (g, 0)),       # per-tile im2col block
            pl.BlockSpec((K9P, COUT_P), lambda g: (0, 0)),       # resident folded conv weights
            pl.BlockSpec((1, COUT_P), lambda g: (0, 0)),
            pl.BlockSpec((TB, TB * M), lambda g: (0, 0)),        # resident GAP matrix
            pl.BlockSpec((COUT_P, HID_P), lambda g: (0, 0)),
            pl.BlockSpec((1, HID_P), lambda g: (0, 0)),
            pl.BlockSpec((HID_P, NC_P), lambda g: (0, 0)),
            pl.BlockSpec((1, NC_P), lambda g: (0, 0)),
        ],
        out_specs=pl.BlockSpec((1, TB, NC_P), lambda g: (g, 0, 0)),
        compiler_params=pltpu.CompilerParams(
            dimension_semantics=("parallel",),   # batch tiles shard across v7x's 2 TCs
            vmem_limit_bytes=32 * 1024 * 1024,
        ),
    )(x_flat, prep["w9"], prep["b_conv"], gap,
      prep["w1"], prep["b1"], prep["wc"], prep["bc"])

    return out.reshape(B, NC_P)[:, :num_classes]


# ---------------------------------------------------------------------------
# Pure-JAX reference (f32) for correctness, deterministic params, test
# ---------------------------------------------------------------------------

def reference_forward(x_nchw, params):
    out = jax.lax.conv_general_dilated(
        x_nchw, params["w_conv"], window_strides=(1, 1), padding="SAME",
        dimension_numbers=("NCHW", "OIHW", "NCHW"))
    out = jnp.maximum(out + params["b_conv"][None, :, None, None], 0.0)
    f = jnp.mean(out, axis=(2, 3))
    h = jnp.maximum(f @ params["w1"] + params["b1"], 0.0)
    return h @ params["wc"] + params["bc"]


def make_params(key, cin=4, cfeat=32, hidden=32, num_classes=10):
    k1, k2, k3, k4 = jax.random.split(key, 4)
    return {
        "w_conv": 0.1 * jax.random.normal(k1, (cfeat, cin, 3, 3), jnp.float32),
        "b_conv": jnp.zeros((cfeat,), jnp.float32),
        "w1": 0.1 * jax.random.normal(k2, (cfeat, hidden), jnp.float32),
        "b1": 0.01 * jnp.ones((hidden,), jnp.float32),
        "wc": 0.1 * jax.random.normal(k3, (hidden, num_classes), jnp.float32),
        "bc": jnp.zeros((num_classes,), jnp.float32),
    }


if __name__ == "__main__":
    key = jax.random.PRNGKey(0)
    kx, kp = jax.random.split(key)
    B, Cin, H, W = 2, 4, 16, 16
    x = jax.random.normal(kx, (B, Cin, H, W), jnp.float32)   # NCHW like PyTorch
    params = make_params(kp, cin=Cin)

    prep = prepare_params(params)                            # one-time weight prep (hoisted)
    prep = jax.tree_util.tree_map(jax.block_until_ready, prep)

    logits = simple_net_forward(x, prep, num_classes=10)
    jax.block_until_ready(logits)
    assert logits.shape == (B, 10) and logits.dtype == jnp.float32

    ref = reference_forward(x, params)
    max_err = float(jnp.max(jnp.abs(logits - ref)))
    assert max_err < 5e-2, f"max abs err vs f32 reference: {max_err}"

    print("KERNEL_OK")
</pallas_src>

<mosaic_0001>
module attributes {stable_mosaic.version = 11 : i64} {
  func.func @fused_simplenet_kernel(%arg0: i32, %arg1: memref<256x128xbf16, #tpu.memory_space<vmem>>, %arg2: memref<128x128xbf16, #tpu.memory_space<vmem>>, %arg3: memref<1x128xf32, #tpu.memory_space<vmem>>, %arg4: memref<1x256xbf16, #tpu.memory_space<vmem>>, %arg5: memref<128x128xbf16, #tpu.memory_space<vmem>>, %arg6: memref<1x128xf32, #tpu.memory_space<vmem>>, %arg7: memref<128x128xbf16, #tpu.memory_space<vmem>>, %arg8: memref<1x128xf32, #tpu.memory_space<vmem>>, %arg9: memref<1x1x128xf32, #tpu.memory_space<vmem>>) attributes {dimension_semantics = [#tpu.dimension_semantics<parallel>], iteration_bounds = array<i64: 2>, scalar_prefetch = 0 : i64, scratch_operands = 0 : i64, tpu.core_type = #tpu.core_type<tc>, window_params = [{transform_indices = @transform_0, window_bounds = array<i64: 256, 128>}, {pipeline_mode = #tpu.pipeline_mode<synchronous>, transform_indices = @transform_1, window_bounds = array<i64: 128, 128>}, {pipeline_mode = #tpu.pipeline_mode<synchronous>, transform_indices = @transform_2, window_bounds = array<i64: 1, 128>}, {pipeline_mode = #tpu.pipeline_mode<synchronous>, transform_indices = @transform_3, window_bounds = array<i64: 1, 256>}, {pipeline_mode = #tpu.pipeline_mode<synchronous>, transform_indices = @transform_4, window_bounds = array<i64: 128, 128>}, {pipeline_mode = #tpu.pipeline_mode<synchronous>, transform_indices = @transform_5, window_bounds = array<i64: 1, 128>}, {pipeline_mode = #tpu.pipeline_mode<synchronous>, transform_indices = @transform_6, window_bounds = array<i64: 128, 128>}, {pipeline_mode = #tpu.pipeline_mode<synchronous>, transform_indices = @transform_7, window_bounds = array<i64: 1, 128>}, {transform_indices = @transform_8, window_bounds = array<i64: 1, 1, 128>}]} {
    %c0 = arith.constant 0 : index
    %c0_0 = arith.constant 0 : index
    %0 = vector.load %arg1[%c0, %c0_0] : memref<256x128xbf16, #tpu.memory_space<vmem>>, vector<256x128xbf16>
    %c0_1 = arith.constant 0 : index
    %c0_2 = arith.constant 0 : index
    %1 = vector.load %arg2[%c0_1, %c0_2] : memref<128x128xbf16, #tpu.memory_space<vmem>>, vector<128x128xbf16>
    %cst = arith.constant dense<0.000000e+00> : vector<256x128xf32>
    %2 = tpu.matmul %0, %1, %cst {dimension_numbers = #tpu.dot_dimension_numbers<[1], [0], [0], [1], [0, 0, 1, 1], [], []>} : vector<256x128xbf16>, vector<128x128xbf16>, vector<256x128xf32> -> vector<256x128xf32>
    %c0_3 = arith.constant 0 : index
    %c0_4 = arith.constant 0 : index
    %3 = vector.load %arg3[%c0_3, %c0_4] : memref<1x128xf32, #tpu.memory_space<vmem>>, vector<1x128xf32>
    %4 = vector.broadcast %3 : vector<1x128xf32> to vector<256x128xf32>
    %5 = arith.addf %2, %4 : vector<256x128xf32>
    %cst_5 = arith.constant 0.000000e+00 : f32
    %6 = vector.broadcast %cst_5 : f32 to vector<256x128xf32>
    %7 = arith.maximumf %5, %6 : vector<256x128xf32>
    %c0_6 = arith.constant 0 : index
    %c0_7 = arith.constant 0 : index
    %8 = vector.load %arg4[%c0_6, %c0_7] : memref<1x256xbf16, #tpu.memory_space<vmem>>, vector<1x256xbf16>
    %9 = arith.truncf %7 : vector<256x128xf32> to vector<256x128xbf16>
    %cst_8 = arith.constant dense<0.000000e+00> : vector<1x128xf32>
    %10 = tpu.matmul %8, %9, %cst_8 {dimension_numbers = #tpu.dot_dimension_numbers<[1], [0], [0], [1], [0, 0, 1, 1], [], []>} : vector<1x256xbf16>, vector<256x128xbf16>, vector<1x128xf32> -> vector<1x128xf32>
    %11 = arith.truncf %10 : vector<1x128xf32> to vector<1x128xbf16>
    %c0_9 = arith.constant 0 : index
    %c0_10 = arith.constant 0 : index
    %12 = vector.load %arg5[%c0_9, %c0_10] : memref<128x128xbf16, #tpu.memory_space<vmem>>, vector<128x128xbf16>
    %cst_11 = arith.constant dense<0.000000e+00> : vector<1x128xf32>
    %13 = tpu.matmul %11, %12, %cst_11 {dimension_numbers = #tpu.dot_dimension_numbers<[1], [0], [0], [1], [0, 0, 1, 1], [], []>} : vector<1x128xbf16>, vector<128x128xbf16>, vector<1x128xf32> -> vector<1x128xf32>
    %c0_12 = arith.constant 0 : index
    %c0_13 = arith.constant 0 : index
    %14 = vector.load %arg6[%c0_12, %c0_13] : memref<1x128xf32, #tpu.memory_space<vmem>>, vector<1x128xf32>
    %15 = arith.addf %13, %14 : vector<1x128xf32>
    %cst_14 = arith.constant 0.000000e+00 : f32
    %16 = vector.broadcast %cst_14 : f32 to vector<1x128xf32>
    %17 = arith.maximumf %15, %16 : vector<1x128xf32>
    %18 = arith.truncf %17 : vector<1x128xf32> to vector<1x128xbf16>
    %c0_15 = arith.constant 0 : index
    %c0_16 = arith.constant 0 : index
    %19 = vector.load %arg7[%c0_15, %c0_16] : memref<128x128xbf16, #tpu.memory_space<vmem>>, vector<128x128xbf16>
    %cst_17 = arith.constant dense<0.000000e+00> : vector<1x128xf32>
    %20 = tpu.matmul %18, %19, %cst_17 {dimension_numbers = #tpu.dot_dimension_numbers<[1], [0], [0], [1], [0, 0, 1, 1], [], []>} : vector<1x128xbf16>, vector<128x128xbf16>, vector<1x128xf32> -> vector<1x128xf32>
    %c0_18 = arith.constant 0 : index
    %c0_19 = arith.constant 0 : index
    %21 = vector.load %arg8[%c0_18, %c0_19] : memref<1x128xf32, #tpu.memory_space<vmem>>, vector<1x128xf32>
    %22 = arith.addf %20, %21 : vector<1x128xf32>
    %c0_20 = arith.constant 0 : index
    %c0_21 = arith.constant 0 : index
    %c0_22 = arith.constant 0 : index
    %23 = vector.load %arg9[%c0_20, %c0_21, %c0_22] : memref<1x1x128xf32, #tpu.memory_space<vmem>>, vector<1x1x128xf32>
    %24 = vector.shape_cast %23 : vector<1x1x128xf32> to vector<1x128xf32>
    %25 = vector.shape_cast %22 : vector<1x128xf32> to vector<1x1x128xf32>
    tpu.vector_store %arg9[%c0_20, %c0_21, %c0_22], %25 {strides = array<i32>} : memref<1x1x128xf32, #tpu.memory_space<vmem>>, vector<1x1x128xf32>,
    return
  }
  func.func @transform_0(%arg0: i32) -> (i32, i32) {
    %c0_i32 = arith.constant 0 : i32
    %c0_i32_0 = arith.constant 0 : i32
    return %arg0, %c0_i32 : i32, i32
  }
  func.func @transform_1(%arg0: i32) -> (i32, i32) {
    %c0_i32 = arith.constant 0 : i32
    %c0_i32_0 = arith.constant 0 : i32
    %c0_i32_1 = arith.constant 0 : i32
    return %c0_i32, %c0_i32_0 : i32, i32
  }
  func.func @transform_2(%arg0: i32) -> (i32, i32) {
    %c0_i32 = arith.constant 0 : i32
    %c0_i32_0 = arith.constant 0 : i32
    %c0_i32_1 = arith.constant 0 : i32
    return %c0_i32, %c0_i32_0 : i32, i32
  }
  func.func @transform_3(%arg0: i32) -> (i32, i32) {
    %c0_i32 = arith.constant 0 : i32
    %c0_i32_0 = arith.constant 0 : i32
    %c0_i32_1 = arith.constant 0 : i32
    return %c0_i32, %c0_i32_0 : i32, i32
  }
  func.func @transform_4(%arg0: i32) -> (i32, i32) {
    %c0_i32 = arith.constant 0 : i32
    %c0_i32_0 = arith.constant 0 : i32
    %c0_i32_1 = arith.constant 0 : i32
    return %c0_i32, %c0_i32_0 : i32, i32
  }
  func.func @transform_5(%arg0: i32) -> (i32, i32) {
    %c0_i32 = arith.constant 0 : i32
    %c0_i32_0 = arith.constant 0 : i32
    %c0_i32_1 = arith.constant 0 : i32
    return %c0_i32, %c0_i32_0 : i32, i32
  }
  func.func @transform_6(%arg0: i32) -> (i32, i32) {
    %c0_i32 = arith.constant 0 : i32
    %c0_i32_0 = arith.constant 0 : i32
    %c0_i32_1 = arith.constant 0 : i32
    return %c0_i32, %c0_i32_0 : i32, i32
  }
  func.func @transform_7(%arg0: i32) -> (i32, i32) {
    %c0_i32 = arith.constant 0 : i32
    %c0_i32_0 = arith.constant 0 : i32
    %c0_i32_1 = arith.constant 0 : i32
    return %c0_i32, %c0_i32_0 : i32, i32
  }
  func.func @transform_8(%arg0: i32) -> (i32, i32, i32) {
    %c0_i32 = arith.constant 0 : i32
    %c0_i32_0 = arith.constant 0 : i32
    %c0_i32_1 = arith.constant 0 : i32
    return %arg0, %c0_i32, %c0_i32_0 : i32, i32, i32
  }
}

</mosaic_0001>

<bundles_post_ra>
// kernel: simple_net_forward.1
= control target key start
LH: loop header
LB: loop body
LE: loop exit
PB: predicated region body
PF: predicated region fallthrough
CT: control target
= control target key end

     0   :  { %13 = vsyncpa [#allocation3], 0  ;;  %s1513_s0 = inlined_call_operand.vmem [shape: bf16[512,128], index: 0, kind: input, shape index: {}]   ;;  %s1514_s1 = inlined_call_operand.vmem [shape: bf16[128,128], index: 1, kind: input, shape index: {}]   ;;  %s1515_s2 = inlined_call_operand.vmem [shape: f32[1,128], index: 2, kind: input, shape index: {}]   ;;  %s1516_s3 = inlined_call_operand.vmem [shape: bf16[1,256], index: 3, kind: input, shape index: {}]   ;;  %s1517_s4 = inlined_call_operand.vmem [shape: bf16[128,128], index: 4, kind: input, shape index: {}]   ;;  %s1518_s5 = inlined_call_operand.vmem [shape: f32[1,128], index: 5, kind: input, shape index: {}]   ;;  %s1519_s6 = inlined_call_operand.vmem [shape: bf16[128,128], index: 6, kind: input, shape index: {}]   ;;  %s1520_s7 = inlined_call_operand.vmem [shape: f32[1,128], index: 7, kind: input, shape index: {}]   ;;  %s1521_s8 = inlined_call_operand.hbm [shape: f32[2,1,128], index: 8, kind: output, shape index: {}]  }
   0x1   :  { %15 = vsyncpa [#allocation3 + $0x1], 0  ;;  %s1272_s27 = smov 0   ;;  %s1274_s28 = smov 0  }
   0x2   :  { %s1276_s29 = smov 0   ;;  %s1278_s30 = smov 0  }
   0x3 LB: > { %s1293_s9 = sadd.s32 4294967295, %s1225_s30   ;;  %s899_s10 = sadd.s32 4294967294, %s1225_s30   ;;  %s1225_s30 = sphi %s1278_s30, %s1527_s30   ;;  %s1221_s29 = sphi %s1276_s29, %s1526_s29   ;;  %s1217_s28 = sphi %s1274_s28, %s1525_s28   ;;  %s1213_s27 = sphi %s1272_s27, %s1524_s27  }
   0x4   : > { %s1297_s11 = sadd.s32 1, %s1225_s30   ;;  %s201_s12 = sadd.s32 1, %s1221_s29 }
   0x5   : > { %s198_s13 = ssub.s32 %s1225_s30, %s1297_s11  ;;  %p211_p0 = scmp.ne.s32.totalorder %s1221_s29, %s1217_s28 }
   0x6   : > { %p199_p1 = scmp.eq.s32.totalorder %s198_s13, 0  ;;  %p212_p2 = scmp.eq.s32.totalorder %s1293_s9, 1 }
   0x7   : > { %p217_p3 = scmp.ne.s32.totalorder %s1217_s28, %s1213_s27  ;;  %p218_p4 = scmp.eq.s32.totalorder %s899_s10, 1 }
   0x8   : > { %s1308_s14 = scalar_select %p199_p1, %s1221_s29, %s201_s12  }
   0x9   : > { %p1310_p5 = por %p212_p2, %p211_p0  ;;  %p1314_p6 = por %p218_p4, %p217_p3 }
   0xa   : > { %p902_p7 = scmp.ge.s32.totalorder %s1225_s30, 1  ;;  %p266_p8 = scmp.lt.s32.totalorder %s1225_s30, 3 }
   0xc   : > { %p267_p9 = pnand %p902_p7, %p266_p8 }
   0xd   : > { %s903_s25 = sshll.u32 (!%p267_p9), %s1293_s9, 5  ;;  %s840_s10 = scalar_lea.hbm (!%p267_p9), %s1521_s8, %s1293_s9 }
   0xe   : > { %270 = sbr.rel (%p267_p9) target bundleno = 700 (0x2bc), region = 52  ;;  %p300_p10 = scmp.lt.s32.totalorder (!%p267_p9), %s903_s25, 63 }
  0x13   : > { %v1090_v0 = vld [vmem:[%s1514_s1 + $0x38] sm:$0xff]  ;;  %v1089_v1 = vld [vmem:[%s1514_s1 + $0x30] sm:$0xff]  ;;  %v1088_v2 = vld [vmem:[%s1514_s1 + $0x28] sm:$0xff]  ;;  %s1529_s25 = smov (!%p300_p10, %s903_s25), 63 }
  0x14   : > { %501 = vmatpush.bf16.msra.mxu0 %v1090_v0  ;;  %1108 = vmatpush.bf16.msra.mxu3 %v1090_v0  ;;  %v1087_v3 = vld [vmem:[%s1514_s1 + $0x20] sm:$0xff]  ;;  %v1086_v4 = vld [vmem:[%s1514_s1 + $0x18] sm:$0xff]  ;;  %v1085_v5 = vld [vmem:[%s1514_s1 + $0x10] sm:$0xff]  ;;  %s904_s19 = sshll.u32 %s1529_s25, 2  ;;  %s1183_s25 = scalar_lea.hbm %s1521_s8, 2 }
  0x15   : > { %1107 = vmatpush.bf16.msra.mxu2 %v1090_v0  ;;  %v1084_v6 = vld [vmem:[%s1514_s1 + $0x8] sm:$0xff]  ;;  %v1083_v7 = vld [vmem:[%s1514_s1] sm:$0xff]  ;;  %s1348_s24 = scalar_lea.vmem %s1513_s0, %s904_s19  ;;  %s844_s19 = sshll.u32 %s840_s10, 4  ;;  %s845_s19 = int_to_ptr.hbm [resolvable:$true] %s844_s19 }
  0x16   : > { %v1067_v8 = vld [vmem:[%s1348_s24] sm:$0xff]  ;;  %v1078_v9 = vld [vmem:[%s1348_s24 + $0x58] sm:$0xff]  ;;  %v1073_v10 = vld [vmem:[%s1348_s24 + $0x30] sm:$0xff]  ;;  %s1177_s21 = sshra.s32 %s845_s19, 4  ;;  %s1178_s21 = int_to_ptr.hbm [resolvable:$true] %s1177_s21 }
  0x17   : > { %v1068_v11 = vld [vmem:[%s1348_s24 + $0x8] sm:$0xff]  ;;  %v1079_v12 = vld [vmem:[%s1348_s24 + $0x60] sm:$0xff]  ;;  %v1074_v13 = vld [vmem:[%s1348_s24 + $0x38] sm:$0xff]  ;;  %s1179_s22 = scalar_lea.hbm %s1178_s21, 1  ;;  %p1184_p0 = scmp.lt.s32.totalorder %s1178_s21, %s1521_s8 }
  0x18   : > { %502 = vmatpush.bf16.msra.mxu0 %v1089_v1  ;;  %1110 = vmatpush.bf16.msra.mxu3 %v1089_v1  ;;  %v1069_v14 = vld [vmem:[%s1348_s24 + $0x10] sm:$0xff]  ;;  %v1080_v15 = vld [vmem:[%s1348_s24 + $0x68] sm:$0xff]  ;;  %v1075_v16 = vld [vmem:[%s1348_s24 + $0x40] sm:$0xff]  ;;  %p1180_p11 = scmp.ne.s32.totalorder %s1178_s21, %s1179_s22  ;;  %p1185_p1 = scmp.lt.s32.totalorder %s1183_s25, %s1179_s22 }
  0x19   : > { %1109 = vmatpush.bf16.msra.mxu2 %v1089_v1  ;;  %v1070_v17 = vld [vmem:[%s1348_s24 + $0x18] sm:$0xff]  ;;  %v1081_v18 = vld [vmem:[%s1348_s24 + $0x70] sm:$0xff]  ;;  %v1076_v19 = vld [vmem:[%s1348_s24 + $0x48] sm:$0xff] }
  0x1a   : > { %v1071_v20 = vld [vmem:[%s1348_s24 + $0x20] sm:$0xff]  ;;  %v1082_v21 = vld [vmem:[%s1348_s24 + $0x78] sm:$0xff]  ;;  %v1077_v22 = vld [vmem:[%s1348_s24 + $0x50] sm:$0xff]  ;;  %p1181_p12 = pnand %p1180_p11, %p1310_p5  ;;  %p1186_p2 = por %p1185_p1, %p1184_p0 }
  0x1b   : > { %v1072_v23 = vld [vmem:[%s1348_s24 + $0x28] sm:$0xff]  ;;  %v1369_v25 = vld [vmem:[%s1515_s2] ss:$0 sm:$0xff]  ;;  %s297_s24 = sand.u32 1, %s1217_s28  }
  0x1c   : > { %503 = vmatpush.bf16.msra.mxu0 %v1088_v2  ;;  %1112 = vmatpush.bf16.msra.mxu3 %v1088_v2  ;;  %s298_s17 = scalar_lea.vmem [#allocation2], %s297_s24  ;;  %s832_s20 = scalar_lea.sflag [#allocation3], %s297_s24 }
  0x1d   : > { %1111 = vmatpush.bf16.msra.mxu2 %v1088_v2  ;;  %s842_s18 = sshll.u32 %s298_s17, 4  ;;  %p1182_p13 = pneg %p1181_p12  ;;  %s843_s18 = int_to_ptr.vmem [resolvable:$true] %s842_s18 }
  0x1f   : > { %p1187_p3 = pnand %p1186_p2, %p1182_p13 }
  0x20   : > { %504 = vmatpush.bf16.msra.mxu0 %v1087_v3  ;;  %1114 = vmatpush.bf16.msra.mxu3 %v1087_v3 }
  0x21   : > { %1113 = vmatpush.bf16.msra.mxu2 %v1087_v3 }
  0x24   : > { %505 = vmatpush.bf16.msra.mxu0 %v1086_v4  ;;  %1116 = vmatpush.bf16.msra.mxu3 %v1086_v4 }
  0x25   : > { %1115 = vmatpush.bf16.msra.mxu2 %v1086_v4 }
  0x28   : > { %506 = vmatpush.bf16.msra.mxu0 %v1085_v5  ;;  %1118 = vmatpush.bf16.msra.mxu3 %v1085_v5 }
  0x29   : > { %1117 = vmatpush.bf16.msra.mxu2 %v1085_v5 }
  0x2c   : > { %507 = vmatpush.bf16.msra.mxu0 %v1084_v6  ;;  %1120 = vmatpush.bf16.msra.mxu3 %v1084_v6 }
  0x2d   : > { %1119 = vmatpush.bf16.msra.mxu2 %v1084_v6 }
  0x30   : > { %508 = vmatpush.bf16.msra.mxu0 %v1083_v7  ;;  %1122 = vmatpush.bf16.msra.mxu3 %v1083_v7 }
  0x31   : > { %1121 = vmatpush.bf16.msra.mxu2 %v1083_v7 }
  0x33   : > { %509 = vmatmul.bf16.vlgmr.msra.gmra.mxu0 %v1067_v8  ;;  %564 = vmatmul.bf16.vlgmr.msra.gmra.mxu3 %v1078_v9 }
  0x34   : > { %539 = vmatmul.bf16.vlgmr.msra.gmra.mxu2 %v1073_v10 }
  0x43   : > { %514 = vmatmul.bf16.gmra.mxu0 %v1068_v11  ;;  %569 = vmatmul.bf16.gmra.mxu3 %v1079_v12 }
  0x44   : > { %544 = vmatmul.bf16.gmra.mxu2 %v1074_v13  ;;  %v622_v13 = vld [vmem:[%s1516_s3] sm:$0x3] }
  0x45   : > { %640 = vst [vmem:[#allocation1] ss:$9 sm:$0xff] %v622_v13 }
  0x53   : > { %519 = vmatmul.bf16.gmra.mxu0 %v1069_v14  ;;  %574 = vmatmul.bf16.gmra.mxu3 %v1080_v15 }
  0x54   : > { %549 = vmatmul.bf16.gmra.mxu2 %v1075_v16 }
  0x63   : > { %524 = vmatmul.bf16.gmra.mxu0 %v1070_v17  ;;  %579 = vmatmul.bf16.gmra.mxu3 %v1081_v18 }
  0x64   : > { %554 = vmatmul.bf16.gmra.mxu2 %v1076_v19 }
  0x73   : > { %529 = vmatmul.bf16.gmra.mxu0 %v1071_v20  ;;  %584 = vmatmul.bf16.gmra.mxu3 %v1082_v21 }
  0x74   : > { %559 = vmatmul.bf16.gmra.mxu2 %v1077_v22 }
  0x83   : > { %534 = vmatmul.bf16.gmra.mxu0 %v1072_v23 }
  0xb0   : > { %v510_v24 = vpop.f32.mrf.mxu0 }
  0xb1   : > { %v511_v27 = vadd.f32 %v1369_v25, %v510_v24 }
  0xb3   : > { %v590_v31 = vmax.f32 %v511_v27, 0.0 }
  0xb6   : > { %v565_v26 = vpop.f32.mrf.mxu3 }
  0xb7   : > { %v540_v28 = vpop.f32.mrf.mxu2  ;;  %v566_v33 = vadd.f32 %v1369_v25, %v565_v26 }
  0xb8   : > { %v512_v29 = vpop.f32.mrf.mxu0  ;;  %v541_v53 = vadd.f32 %v1369_v25, %v540_v28 }
  0xb9   : > { %v513_v30 = vadd.f32 %v1369_v25, %v512_v29  ;;  %v612_v39 = vmax.f32 %v566_v33, 0.0 }
  0xba   : > { %v602_v59 = vmax.f32 %v541_v53, 0.0 }
  0xbb   : > { %v591_v32 = vmax.f32 %v513_v30, 0.0  ;;  %v1098_v30 = vld [vmem:[%s1517_s4 + $0x38] sm:$0xff] }
  0xbc   : > { %737 = vmatpush.bf16.msrb.mxu3 %v1098_v30 }
  0xbd   : > { %v1374_v34 = vpack.c.bf16 %v591_v32, %v590_v31 }
  0xbe   : > { %v567_v35 = vpop.f32.mrf.mxu3 }
  0xbf   : > { %v568_v36 = vadd.f32 %v1369_v25, %v567_v35  ;;  %v542_v37 = vpop.f32.mrf.mxu2 }
  0xc0   : > { %v515_v38 = vpop.f32.mrf.mxu0  ;;  %v543_v55 = vadd.f32 %v1369_v25, %v542_v37 }
  0xc1   : > { %v613_v40 = vmax.f32 %v568_v36, 0.0  ;;  %v516_v43 = vadd.f32 %v1369_v25, %v515_v38  ;;  %v1097_v36 = vld [vmem:[%s1517_s4 + $0x30] sm:$0xff] }
  0xc2   : > { %v603_v60 = vmax.f32 %v543_v55, 0.0  ;;  %738 = vmatpush.bf16.msrb.mxu3 %v1097_v36  ;;  %v688_v36 = vld [vmem:[%s1518_s5] sm:$0x1] }
  0xc3   : > { %v1377_v41 = vpack.c.bf16 %v613_v40, %v612_v39  ;;  %v592_v47 = vmax.f32 %v516_v43, 0.0 }
  0xc4   : > { %v629_v0 = vpack.c.bf16 %v603_v60, %v602_v59  ;;  %v1095_v60 = vld [vmem:[%s1517_s4 + $0x20] sm:$0xff] }
  0xc6   : > { %v570_v42 = vpop.f32.mrf.mxu3 }
  0xc7   : > { %v545_v44 = vpop.f32.mrf.mxu2  ;;  %v571_v37 = vadd.f32 %v1369_v25, %v570_v42 }
  0xc8   : > { %v517_v45 = vpop.f32.mrf.mxu0  ;;  %v546_v49 = vadd.f32 %v1369_v25, %v545_v44 }
  0xc9   : > { %v518_v46 = vadd.f32 %v1369_v25, %v517_v45 }
  0xca   : > { %v604_v56 = vmax.f32 %v546_v49, 0.0  ;;  %v1096_v49 = vld [vmem:[%s1517_s4 + $0x28] sm:$0xff] }
  0xcb   : > { %v593_v48 = vmax.f32 %v518_v46, 0.0  ;;  %739 = vmatpush.bf16.msrb.mxu3 %v1096_v49 }
  0xcd   : > { %v1382_v50 = vpack.c.bf16 %v593_v48, %v592_v47 }
  0xce   : > { %v572_v51 = vpop.f32.mrf.mxu3 }
  0xcf   : > { %v547_v52 = vpop.f32.mrf.mxu2  ;;  %v573_v29 = vadd.f32 %v1369_v25, %v572_v51  ;;  %v614_v51 = vmax.f32 %v571_v37, 0.0  ;;  %740 = vmatpush.bf16.msrb.mxu3 %v1095_v60 }
  0xd0   : > { %v1385_v54 = vpop.f32.mrf.mxu0  ;;  %v548_v57 = vadd.f32 %v1369_v25, %v547_v52 }
  0xd1   : > { %v615_v43 = vmax.f32 %v573_v29, 0.0 }
  0xd2   : > { %v605_v58 = vmax.f32 %v548_v57, 0.0 }
  0xd4   : > { %v630_v61 = vpack.c.bf16 %v605_v58, %v604_v56  ;;  %v635_v58 = vpack.c.bf16 %v615_v43, %v614_v51 }
  0xd6   : > { %v575_v62 = vpop.f32.mrf.mxu3  ;;  %645 = vmatpush.bf16.msra.mxu1 %v630_v61 }
  0xd7   : > { %v1391_v1 = vpop.f32.mrf.mxu2  ;;  %v576_v27 = vadd.f32 %v1369_v25, %v575_v62 }
  0xd8   : > { %v1389_v63 = vpop.f32.mrf.mxu0 }
  0xd9   : > { %v616_v38 = vmax.f32 %v576_v27, 0.0  ;;  %v523_v61 = vadd.f32 %v1369_v25, %v1389_v63 }
  0xda   : > { %646 = vmatpush.bf16.msra.mxu1 %v629_v0 }
  0xdb   : > { %v595_v63 = vmax.f32 %v523_v61, 0.0 }
  0xde   : > { %v577_v2 = vpop.f32.mrf.mxu3 }
  0xdf   : > { %v1393_v4 = vpop.f32.mrf.mxu2  ;;  %v578_v23 = vadd.f32 %v1369_v25, %v577_v2  ;;  %v521_v2 = vadd.f32 %v1369_v25, %v1385_v54  ;;  %v551_v54 = vadd.f32 %v1369_v25, %v1391_v1 }
  0xe0   : > { %v525_v3 = vpop.f32.mrf.mxu0 }
  0xe1   : > { %v617_v31 = vmax.f32 %v578_v23, 0.0  ;;  %v526_v55 = vadd.f32 %v1369_v25, %v525_v3  ;;  %v594_v13 = vmax.f32 %v521_v2, 0.0  ;;  %v1103_v23 = vld [vmem:[%s1519_s6 + $0x20] sm:$0xff] }
  0xe3   : > { %v636_v47 = vpack.c.bf16 %v617_v31, %v616_v38  ;;  %v596_v3 = vmax.f32 %v526_v55, 0.0 }
  0xe6   : > { %v580_v5 = vpop.f32.mrf.mxu3 }
  0xe7   : > { %v555_v8 = vpop.f32.mrf.mxu2  ;;  %v581_v19 = vadd.f32 %v1369_v25, %v580_v5 }
  0xe8   : > { %v527_v6 = vpop.f32.mrf.mxu0  ;;  %v556_v5 = vadd.f32 %v1369_v25, %v555_v8  ;;  %v553_v8 = vadd.f32 %v1369_v25, %v1393_v4  ;;  %v642_v4 = vld [vmem:[#allocation1 + $0x9] sm:$0xff] }
  0xe9   : > { %v618_v28 = vmax.f32 %v581_v19, 0.0  ;;  %v528_v42 = vadd.f32 %v1369_v25, %v527_v6 }
  0xeb   : > { %v597_v62 = vmax.f32 %v528_v42, 0.0 }
  0xee   : > { %v582_v7 = vpop.f32.mrf.mxu3 }
  0xef   : > { %v557_v12 = vpop.f32.mrf.mxu2  ;;  %v583_v16 = vadd.f32 %v1369_v25, %v582_v7 }
  0xf0   : > { %v530_v9 = vpop.f32.mrf.mxu0  ;;  %v558_v6 = vadd.f32 %v1369_v25, %v557_v12  ;;  %v608_v12 = vmax.f32 %v556_v5, 0.0 }
  0xf1   : > { %v619_v24 = vmax.f32 %v583_v16, 0.0  ;;  %v531_v44 = vadd.f32 %v1369_v25, %v530_v9  ;;  %v1093_v16 = vld [vmem:[%s1517_s4 + $0x10] sm:$0xff] }
  0xf3   : > { %v637_v33 = vpack.c.bf16 %v619_v24, %v618_v28  ;;  %v598_v56 = vmax.f32 %v531_v44, 0.0  ;;  %v1102_v24 = vld [vmem:[%s1519_s6 + $0x18] sm:$0xff]  ;;  %v768_v44 = vld [vmem:[%s1520_s7] sm:$0x1] }
  0xf6   : > { %v585_v10 = vpop.f32.mrf.mxu3 }
  0xf7   : > { %v586_v14 = vadd.f32 %v1369_v25, %v585_v10  ;;  %v560_v22 = vpop.f32.mrf.mxu2  ;;  %v1094_v10 = vld [vmem:[%s1517_s4 + $0x18] sm:$0xff] }
  0xf8   : > { %v532_v11 = vpop.f32.mrf.mxu0  ;;  %v561_v57 = vadd.f32 %v1369_v25, %v560_v22  ;;  %741 = vmatpush.bf16.msrb.mxu3 %v1094_v10  ;;  %v1106_v22 = vld [vmem:[%s1519_s6 + $0x38] sm:$0xff] }
  0xf9   : > { %v620_v20 = vmax.f32 %v586_v14, 0.0  ;;  %v533_v39 = vadd.f32 %v1369_v25, %v532_v11  ;;  %v626_v11 = vpack.c.bf16 %v597_v62, %v596_v3  ;;  %v609_v14 = vmax.f32 %v558_v6, 0.0 }
  0xfa   : > { %v610_v7 = vmax.f32 %v561_v57, 0.0 }
  0xfb   : > { %v599_v52 = vmax.f32 %v533_v39, 0.0  ;;  %v632_v19 = vpack.c.bf16 %v609_v14, %v608_v12 }
  0xfc   : > { %742 = vmatpush.bf16.msrb.mxu3 %v1093_v16 }
  0xfd   : > { %v627_v0 = vpack.c.bf16 %v599_v52, %v598_v56 }
  0xfe   : > { %v587_v15 = vpop.f32.mrf.mxu3 }
  0xff   : > { %v588_v17 = vadd.f32 %v1369_v25, %v587_v15  ;;  %v562_v48 = vpop.f32.mrf.mxu2 }
 0x100   : > { %v535_v18 = vpop.f32.mrf.mxu0  ;;  %v563_v59 = vadd.f32 %v1369_v25, %v562_v48 }
 0x101   : > { %v621_v21 = vmax.f32 %v588_v17, 0.0  ;;  %v536_v32 = vadd.f32 %v1369_v25, %v535_v18  ;;  %v625_v17 = vpack.c.bf16 %v595_v63, %v594_v13  ;;  %v607_v18 = vmax.f32 %v553_v8, 0.0 }
 0x102   : > { %v611_v9 = vmax.f32 %v563_v59, 0.0 }
 0x103   : > { %v638_v26 = vpack.c.bf16 %v621_v21, %v620_v20  ;;  %v600_v45 = vmax.f32 %v536_v32, 0.0  ;;  %v641_v20 = vld [vmem:[#allocation1] sm:$0xff] }
 0x104   : > { %v633_v15 = vpack.c.bf16 %v611_v9, %v610_v7  ;;  %v1091_v21 = vld [vmem:[%s1517_s4] sm:$0xff] }
 0x105   : > { %658 = vmatpush.bf16.msrb.mxu2 %v638_v26  ;;  %v1101_v26 = vld [vmem:[%s1519_s6 + $0x10] sm:$0xff] }
 0x108   : > { %v537_v35 = vpop.f32.mrf.mxu0 }
 0x109   : > { %v538_v40 = vadd.f32 %v1369_v25, %v537_v35  ;;  %659 = vmatpush.bf16.msrb.mxu2 %v637_v33  ;;  %v1092_v25 = vld [vmem:[%s1517_s4 + $0x8] sm:$0xff]  ;;  %v1099_v35 = vld [vmem:[%s1519_s6] sm:$0xff] }
 0x10a   : > { %743 = vmatpush.bf16.msrb.mxu3 %v1092_v25  ;;  %v1100_v33 = vld [vmem:[%s1519_s6 + $0x8] sm:$0xff] }
 0x10b   : > { %v601_v46 = vmax.f32 %v538_v40, 0.0 }
 0x10d   : > { %660 = vmatpush.bf16.msrb.mxu2 %v636_v47  ;;  %v628_v53 = vpack.c.bf16 %v601_v46, %v600_v45 }
 0x10e   : > { %744 = vmatpush.bf16.msrb.mxu3 %v1091_v21 }
 0x10f   : > { %647 = vmatpush.bf16.msra.mxu1 %v628_v53 }
 0x111   : > { %661 = vmatpush.bf16.msrb.mxu2 %v635_v58 }
 0x113   : > { %648 = vmatpush.bf16.msra.mxu1 %v627_v0 }
 0x115   : > { %662 = vmatpush.bf16.msrb.mxu2 %v1377_v41  ;;  %v606_v41 = vmax.f32 %v551_v54, 0.0 }
 0x117   : > { %649 = vmatpush.bf16.msra.mxu1 %v626_v11  ;;  %v631_v1 = vpack.c.bf16 %v607_v18, %v606_v41 }
 0x119   : > { %663 = vmatpush.bf16.msrb.mxu2 %v633_v15 }
 0x11b   : > { %650 = vmatpush.bf16.msra.mxu1 %v625_v17 }
 0x11d   : > { %664 = vmatpush.bf16.msrb.mxu2 %v632_v19 }
 0x11f   : > { %651 = vmatpush.bf16.msra.mxu1 %v1382_v50  ;;  %v1105_v50 = vld [vmem:[%s1519_s6 + $0x30] sm:$0xff] }
 0x121   : > { %665 = vmatpush.bf16.msrb.mxu2 %v631_v1 }
 0x123   : > { %652 = vmatpush.bf16.msra.mxu1 %v1374_v34  ;;  %v1104_v34 = vld [vmem:[%s1519_s6 + $0x28] sm:$0xff] }
 0x124   : > { %666 = vmatmul.bf16.vlgmr.msrb.gmra.mxu2 %v642_v4 }
 0x126   : > { %653 = vmatmul.bf16.vlgmr.msra.gmra.mxu1 %v641_v20 }
 0x127   : > { %817 = vmatpush.bf16.msrb.mxu1 %v1106_v22 }
 0x12b   : > { %818 = vmatpush.bf16.msrb.mxu1 %v1105_v50 }
 0x12f   : > { %819 = vmatpush.bf16.msrb.mxu1 %v1104_v34 }
 0x133   : > { %820 = vmatpush.bf16.msrb.mxu1 %v1103_v23 }
 0x137   : > { %821 = vmatpush.bf16.msrb.mxu1 %v1102_v24 }
 0x13b   : > { %822 = vmatpush.bf16.msrb.mxu1 %v1101_v26 }
 0x13f   : > { %823 = vmatpush.bf16.msrb.mxu1 %v1100_v33 }
 0x143   : > { %824 = vmatpush.bf16.msrb.mxu1 %v1099_v35 }
 0x1a3   : > { %v654_v27 = vpop.f32.mrf.mxu1 }
 0x1a7   : > { %v667_v28 = vpop.f32.mrf.mxu2 }
 0x1a8   : > { %v668_v29 = vadd.f32 %v667_v28, %v654_v27 }
 0x1aa   : > { %v671_v30 = vpack.c.bf16 %v668_v29, %v668_v29 }
 0x1ab   : > { %v656_v31 = vpop.f32.mrf.mxu1 }
 0x1ac   : > { %745 = vmatmul.bf16.vlgmr.msrb.gmra.mxu3 %v671_v30 }
 0x1af   : > { %v669_v32 = vpop.f32.mrf.mxu2 }
 0x22f   : > { %v746_v37 = vpop.f32.mrf.mxu3 }
 0x230   : > { %v747_v38 = vadd.f32 %v746_v37, %v688_v36 }
 0x232   : > { %v750_v39 = vmax.f32 %v747_v38, 0.0 }
 0x234   : > { %v751_v40 = vpack.c.bf16 %v750_v39, %v750_v39 }
 0x236   : > { %825 = vmatmul.bf16.vlgmr.msrb.gmra.mxu1 %v751_v40 }
 0x237   : > { %v748_v43 = vpop.f32.mrf.mxu3 }
 0x2b3   : > { %v826_v45 = vpop.f32.mrf.mxu1 }
 0x2b4   : > { %v827_v46 = vadd.f32 %v826_v45, %v768_v44 }
 0x2b6   : > { %830 = vst [vmem:[%s298_s17] sm:$0x1] %v827_v46 }
 0x2b7   : > { %1190 = shalt.err (!%p1187_p3)
}
 0x2b8   : > { %1123 = dma.vmem_to_hbm [thread:$0]  (%p1310_p5), %s843_s18, 16, %s845_s19, %s832_s20  }
 0x2bb   : > { %v828_v47 = vpop.f32.mrf.mxu1 }
 0x2bc PF: > { %p1129_p4 = scmp.ge.s32.totalorder %s1225_s30, 2  ;;  %s856_s24 = sand.u32 1, %s1213_s27  }
 0x2bd   : > { %s857_s10 = scalar_lea.sflag [#allocation3], %s856_s24 }
 0x2be   : > { %p1126_p7 = pnand %p1129_p4, %p1314_p6 }
 0x2c0   : > { %p1127_p8 = pneg %p1126_p7 }
 0x2c2   : > { %1208 = dma.done.wait (%p1127_p8), %s857_s10, 16  }
 0x2c3   : > { %1210 = vsyncadd (%p1127_p8), %s857_s10, 4294967280  ;;  %p18_p9 = scmp.ge.s32.totalorder %s1297_s11, 4   ;;  %s1524_s27 = smov %s1217_s28 }
 0x2c4   : > { %s1525_s28 = smov %s1221_s29  ;;  %s1526_s29 = smov %s1308_s14 }
 0x2c5   : > { %s1527_s30 = smov %s1297_s11  ;;  %20 = sbr.rel (!%p18_p9) target bundleno = 3 (0x3), region = 87 }
 0x2ca   :  { %862 = vsyncpa [#allocation3], 1 }
 0x2cb   :  { %864 = vsyncpa [#allocation3 + $0x1], 1 }

</bundles_post_ra>
